<compile_context>
chip_gen: v6e
topology: v6e:2x2x1
jax: 0.10.0
libtpu: 0.0.40
codegen_flags: <defaults>
</compile_context>

<pallas_src>
import math
import jax
import jax.numpy as jnp
from jax.experimental import pallas as pl
from jax.experimental.pallas import tpu as pltpu


def _reparametrize_kernel(x_ref, w_ref, b_ref, o_ref):
    x = x_ref[...]                                            # (TB, TF)
    # exp in f32 on the EUP, cast once per (1, TF) row to the compute dtype.
    ew = jnp.exp(w_ref[...].astype(jnp.float32)).astype(x.dtype)   # (1, TF)
    b = b_ref[...].astype(x.dtype)                                  # (1, TF)
    o_ref[...] = (x * ew + b).astype(o_ref.dtype)


def _round_up(n, m):
    return ((n + m - 1) // m) * m


# sublane packing per itemsize (f32 -> 8 rows/vreg, bf16 -> 16, int8/fp8 -> 32)
_SUBLANE = {4: 8, 2: 16, 1: 32}


def reparametrize(x, weight, bias, *,
                  target_tile_bytes=2 * 1024 * 1024,
                  max_block_cols=2048,
                  min_split_bytes=256 * 1024):
    """x: (B, F); weight, bias: (F,).  Returns x * exp(weight) + bias."""
    # TODO(synk): bias=None (module's bias=False ctor arg) is not supported;
    # the reference forward would also fail in that case.
    B, F = x.shape
    dt = x.dtype
    itemsize = jnp.dtype(dt).itemsize
    sublane = _SUBLANE.get(itemsize, 8)

    # ---- feature (lane) tile ------------------------------------------------
    # Full F if it fits the column cap (full-dim exception handles F % 128 != 0),
    # otherwise a 128-multiple tile; the last block may be ragged (masked).
    if F <= max_block_cols:
        TF = F
    else:
        TF = max(128, (max_block_cols // 128) * 128)
    n_f = pl.cdiv(F, TF)

    # ---- batch (sublane) tile -----------------------------------------------
    # Byte-targeted: ~target_tile_bytes of x per block, sublane-rounded,
    # never more rows than the (rounded-up) batch.
    TB = max(sublane, (target_tile_bytes // (TF * itemsize)) // sublane * sublane)
    TB = min(TB, _round_up(B, sublane))
    # Keep the grid >= 2 steps when possible (v7x: both TensorCores pull from
    # HBM), as long as each split tile stays reasonably sized.
    if n_f == 1 and TB >= B and B > sublane:
        half = _round_up(pl.cdiv(B, 2), sublane)
        if half * TF * itemsize >= min_split_bytes:
            TB = half
    n_b = pl.cdiv(B, TB)

    w2 = weight.reshape(1, F)
    b2 = bias.reshape(1, F)

    return pl.pallas_call(
        _reparametrize_kernel,
        out_shape=jax.ShapeDtypeStruct((B, F), dt),
        grid=(n_b, n_f),
        in_specs=[
            pl.BlockSpec((TB, TF), lambda i, j: (i, j)),  # x: tiled batch x feature
            pl.BlockSpec((1, TF), lambda i, j: (0, j)),   # weight: per feature block
            pl.BlockSpec((1, TF), lambda i, j: (0, j)),   # bias:   per feature block
        ],
        out_specs=pl.BlockSpec((TB, TF), lambda i, j: (i, j)),
        compiler_params=pltpu.CompilerParams(
            dimension_semantics=("parallel", "parallel"),
            vmem_limit_bytes=32 * 1024 * 1024,
        ),
    )(x, w2, b2)


if __name__ == "__main__":
    key = jax.random.PRNGKey(0)
    kx, kw, kb, kx2, kw2, kb2 = jax.random.split(key, 6)

    # Small shapes consistent with the module.
    batch = 8
    in_features = 128

    # Deterministic parameter init mirroring reset_parameters():
    # uniform(-stdv, stdv) with stdv = 1/sqrt(in_features)
    stdv = 1.0 / math.sqrt(in_features)
    weight = jax.random.uniform(kw, (in_features,), jnp.float32, -stdv, stdv)
    bias = jax.random.uniform(kb, (in_features,), jnp.float32, -stdv, stdv)

    # input plays the role of eta ~ N(0, I)
    x = jax.random.normal(kx, (batch, in_features), jnp.float32)

    out = jax.block_until_ready(reparametrize(x, weight, bias))
    ref = x * jnp.exp(weight)[None, :] + bias[None, :]
    assert out.shape == (batch, in_features)
    assert jnp.allclose(out, ref, atol=1e-6, rtol=1e-6)

    # Exercise ragged batch, non-multiple-of-128 feature dim, and forced
    # feature tiling (max_block_cols=128 -> 2 feature blocks, last one ragged).
    F2 = 200
    stdv2 = 1.0 / math.sqrt(F2)
    weight2 = jax.random.uniform(kw2, (F2,), jnp.float32, -stdv2, stdv2)
    bias2 = jax.random.uniform(kb2, (F2,), jnp.float32, -stdv2, stdv2)
    x2 = jax.random.normal(kx2, (1037, F2), jnp.float32)
    out2 = jax.block_until_ready(
        reparametrize(x2, weight2, bias2, max_block_cols=128))
    ref2 = x2 * jnp.exp(weight2)[None, :] + bias2[None, :]
    assert jnp.allclose(out2, ref2, atol=1e-6, rtol=1e-6)

    print("KERNEL_OK")
</pallas_src>

<mosaic_0001>
module attributes {stable_mosaic.version = 11 : i64} {
  func.func @_reparametrize_kernel(%arg0: i32, %arg1: i32, %arg2: memref<8x128xf32, #tpu.memory_space<vmem>>, %arg3: memref<1x128xf32, #tpu.memory_space<vmem>>, %arg4: memref<1x128xf32, #tpu.memory_space<vmem>>, %arg5: memref<8x128xf32, #tpu.memory_space<vmem>>) attributes {dimension_semantics = [#tpu.dimension_semantics<parallel>, #tpu.dimension_semantics<parallel>], iteration_bounds = array<i64: 1, 1>, scalar_prefetch = 0 : i64, scratch_operands = 0 : i64, tpu.core_type = #tpu.core_type<tc>, window_params = [{transform_indices = @transform_0, window_bounds = array<i64: 8, 128>}, {transform_indices = @transform_1, window_bounds = array<i64: 1, 128>}, {transform_indices = @transform_2, window_bounds = array<i64: 1, 128>}, {transform_indices = @transform_3, window_bounds = array<i64: 8, 128>}]} {
    %c0 = arith.constant 0 : index
    %c0_0 = arith.constant 0 : index
    %0 = vector.load %arg2[%c0, %c0_0] : memref<8x128xf32, #tpu.memory_space<vmem>>, vector<8x128xf32>
    %c0_1 = arith.constant 0 : index
    %c0_2 = arith.constant 0 : index
    %1 = vector.load %arg3[%c0_1, %c0_2] : memref<1x128xf32, #tpu.memory_space<vmem>>, vector<1x128xf32>
    %2 = math.exp %1 : vector<1x128xf32>
    %c0_3 = arith.constant 0 : index
    %c0_4 = arith.constant 0 : index
    %3 = vector.load %arg4[%c0_3, %c0_4] : memref<1x128xf32, #tpu.memory_space<vmem>>, vector<1x128xf32>
    %4 = vector.broadcast %2 : vector<1x128xf32> to vector<8x128xf32>
    %5 = arith.mulf %0, %4 : vector<8x128xf32>
    %6 = vector.broadcast %3 : vector<1x128xf32> to vector<8x128xf32>
    %7 = arith.addf %5, %6 : vector<8x128xf32>
    %c0_5 = arith.constant 0 : index
    %c0_6 = arith.constant 0 : index
    %8 = vector.load %arg5[%c0_5, %c0_6] : memref<8x128xf32, #tpu.memory_space<vmem>>, vector<8x128xf32>
    tpu.vector_store %arg5[%c0_5, %c0_6], %7 {strides = array<i32>} : memref<8x128xf32, #tpu.memory_space<vmem>>, vector<8x128xf32>,
    return
  }
  func.func @transform_0(%arg0: i32, %arg1: i32) -> (i32, i32) {
    %c0_i32 = arith.constant 0 : i32
    return %arg0, %arg1 : i32, i32
  }
  func.func @transform_1(%arg0: i32, %arg1: i32) -> (i32, i32) {
    %c0_i32 = arith.constant 0 : i32
    %c0_i32_0 = arith.constant 0 : i32
    return %c0_i32, %arg1 : i32, i32
  }
  func.func @transform_2(%arg0: i32, %arg1: i32) -> (i32, i32) {
    %c0_i32 = arith.constant 0 : i32
    %c0_i32_0 = arith.constant 0 : i32
    return %c0_i32, %arg1 : i32, i32
  }
  func.func @transform_3(%arg0: i32, %arg1: i32) -> (i32, i32) {
    %c0_i32 = arith.constant 0 : i32
    return %arg0, %arg1 : i32, i32
  }
}

</mosaic_0001>

<bundles_post_ra>
// kernel: tpu_custom_call.1
= control target key start
LH: loop header
LB: loop body
LE: loop exit
PB: predicated region body
PF: predicated region fallthrough
CT: control target
= control target key end

     0   :  { %8 = vsyncpa [#allocation3], 0  ;;  %s145_s0 = inlined_call_operand.hbm [shape: f32[8,128], index: 0, kind: input, shape index: {}]   ;;  %s146_s1 = inlined_call_operand.vmem [shape: f32[1,128], index: 1, kind: input, shape index: {}]   ;;  %s147_s2 = inlined_call_operand.vmem [shape: f32[1,128], index: 2, kind: input, shape index: {}]   ;;  %s148_s3 = inlined_call_operand.hbm [shape: f32[8,128], index: 3, kind: output, shape index: {}]  }
   0x1   :  { %9 = vsyncpa [#allocation4], 0  ;;  %s111_s12 = smov [#allocation2]  }
   0x2   :  { %s16_s13 = sshll.u32 %s111_s12, 4  ;;  %s17_s13 = int_to_ptr.vmem [resolvable:$true] %s16_s13 }
   0x3   :  { %s75_s14 = scalar_lea.vmem %s17_s13, 128  ;;  %p80_p1 = scmp.lt.s32.totalorder %s17_s13, %s17_s13 }
   0x4   :  { %p76_p0 = scmp.ne.s32.totalorder %s17_s13, %s75_s14  ;;  %p81_p2 = scmp.lt.s32.totalorder %s75_s14, %s75_s14 }
   0x6   :  { %p82_p3 = por %p81_p2, %p80_p1 }
   0x8   :  { %p83_p4 = pnand %p82_p3, %p76_p0 }
   0xa   :  { %86 = shalt.err (!%p83_p4)
}
   0xb   :  { %19 = dma.hbm_to_vmem [thread:$0]  %s145_s0, 128, %s17_s13, [#allocation3]  }
   0xc   :  { %107 = dma.done.wait [#allocation3], 128  }
   0xd   :  { %108 = vsyncadd [#allocation3], 4294967168  ;;  %v28_v0 = vld [vmem:[%s146_s1] sm:$0x1]  ;;  %v33_v2 = vlaneseq  ;;  %s112_s21 = smov [#allocation5]  }
   0xe   :  { %v29_v1 = vmul.f32 1.442695, %v28_v0  ;;  %v27_v6 = vld [vmem:[#allocation2] sm:$0xff]  ;;  %s53_s0 = sshll.u32 %s112_s21, 4  ;;  %s54_s0 = int_to_ptr.vmem [resolvable:$true] %s53_s0 }
   0xf   :  { %v34_v3 = vshrl.u32 %v33_v2, 7  ;;  %v62_v8 = vld [vmem:[%s147_s2] ss:$0 sm:$0xff]  ;;  %s87_s22 = scalar_lea.vmem %s54_s0, 128  ;;  %p92_p6 = scmp.lt.s32.totalorder %s54_s0, %s54_s0 }
  0x10   :  { %65 = vpow2.f32 %v29_v1  ;;  %p88_p5 = scmp.ne.s32.totalorder %s54_s0, %s87_s22  ;;  %p93_p7 = scmp.lt.s32.totalorder %s87_s22, %s87_s22 }
  0x11   :  { %v35_v4 = vsub.s32 0, %v34_v3 }
  0x12   :  { %p94_p8 = por %p93_p7, %p92_p6 }
  0x14   :  { %p95_p9 = pnand %p94_p8, %p88_p5 }
  0x1d   :  { %v66_v5 = vpop.eup %65 }
  0x1e   :  { %v36_v7 = vrot.slane %v66_v5, %v35_v4 }
  0x20   :  { %v38_v9 = vmul.f32 %v36_v7, %v27_v6 }
  0x22   :  { %v45_v10 = vadd.f32 %v62_v8, %v38_v9 }
  0x24   :  { %46 = vst [vmem:[#allocation5] sm:$0xff] %v45_v10 }
  0x25   :  { %98 = shalt.err (!%p95_p9)
}
  0x26   :  { %56 = dma.vmem_to_hbm [thread:$0]  %s54_s0, 128, %s148_s3, [#allocation4]  }
  0x27   :  { %109 = dma.done.wait [#allocation4], 128  }
  0x28   :  { %110 = vsyncadd [#allocation4], 4294967168 }
  0x29   :  { %60 = vsyncpa [#allocation3], 1 }
  0x2a   :  { %61 = vsyncpa [#allocation4], 1 }

</bundles_post_ra>
